<compile_context>
chip_gen: v6e
topology: v6e:2x2x1
jax: 0.10.0
libtpu: 0.0.40
codegen_flags: <defaults>
</compile_context>

<pallas_src>
import functools

import numpy as np

import jax
import jax.numpy as jnp
from jax.experimental import pallas as pl
from jax.experimental.pallas import tpu as pltpu


# -----------------------------------------------------------------------------
# small helpers
# -----------------------------------------------------------------------------
def _round_up(x, m):
    return ((x + m - 1) // m) * m


def _cpad(c):
    """Channel count carried through the network (lane-dense, >= 128)."""
    return max(128, _round_up(c, 128))


def _choose_tn(cout_pad):
    """Output-channel tile; >=2 tiles for 512-wide layers (v7x megacore)."""
    return 256 if cout_pad >= 256 else cout_pad


@functools.lru_cache(maxsize=None)
def _group_onehots(tile_c, cg):
    """One-hot channel->group maps for one channel tile (tile_c % cg == 0)."""
    gt = tile_c // cg
    gidx = np.arange(tile_c) // cg
    m = np.zeros((tile_c, gt), np.float32)
    m[np.arange(tile_c), gidx] = 1.0
    return jnp.asarray(m), jnp.asarray(np.ascontiguousarray(m.T))


@functools.lru_cache(maxsize=None)
def _slab_mask(L, wpad, w):
    """(L,1) f32 validity mask of the conv slab: row q valid iff q % wpad < w."""
    q = np.arange(L)
    return jnp.asarray(((q % wpad) < w).astype(np.float32).reshape(L, 1))


# -----------------------------------------------------------------------------
# in-kernel GroupNorm helper: folded scale/bias, merged statistic matmuls
# -----------------------------------------------------------------------------
def _gn_affine(acc, mask, gm, gmt, gamma, beta, denom, eps):
    """Return per-channel (scale, bias) rows so GN(x) == x*scale + bias."""
    am = acc if mask is None else acc * mask
    s = jnp.sum(am, axis=0, keepdims=True)                       # (1, tn)
    ss = jnp.sum(am * acc, axis=0, keepdims=True)                # (1, tn)
    st = jnp.concatenate([s, ss], axis=0)                        # (2, tn)
    g = jnp.dot(st, gm, preferred_element_type=jnp.float32)      # (2, Gt)
    inv_d = 1.0 / denom
    mean_g = g[0:1] * inv_d
    var_g = jnp.maximum(g[1:2] * inv_d - mean_g * mean_g, 0.0)
    inv_g = jax.lax.rsqrt(var_g + eps)
    mi = jnp.dot(jnp.concatenate([mean_g, inv_g], axis=0), gmt,
                 preferred_element_type=jnp.float32)             # (2, tn)
    scale = mi[1:2] * gamma
    bias = beta - mi[0:1] * scale
    return scale, bias


# -----------------------------------------------------------------------------
# Pallas kernels
# -----------------------------------------------------------------------------
def _conv3x3_gn_kernel(xf_ref, w_ref, g_ref, b_ref, m_ref, gm_ref, gmt_ref,
                       o_ref, *, wpad, L, denom, eps, relu):
    """Fused stride-1 3x3 conv (9 taps accumulated on the MXU) + GroupNorm
    (+ReLU).  xf_ref is the zero-padded, spatially flattened input; each tap's
    LHS is a contiguous row window of it, so no in-kernel reshape is needed."""
    acc = None
    for t in range(9):
        ky, kx = divmod(t, 3)
        q0 = ky * wpad + kx
        a = xf_ref[0, q0:q0 + L, :]                              # (L, Cin) bf16
        d = jnp.dot(a, w_ref[t], preferred_element_type=jnp.float32)
        acc = d if acc is None else acc + d
    mask = m_ref[...]                                            # (L, 1) f32
    scale, bias = _gn_affine(acc, mask, gm_ref[...], gmt_ref[...],
                             g_ref[...], b_ref[...], denom, eps)
    y = (acc * scale + bias) * mask
    if relu:
        y = jnp.maximum(y, 0.0)
    o_ref[0] = y.astype(o_ref.dtype)


def _conv3x3_gn_ib_res_kernel(xf_ref, w_ref, g_ref, b_ref, s_ref, r_ref, m_ref,
                              gm_ref, gmt_ref, o_ref, *, wpad, L, denom, eps,
                              relu):
    """Fused stride-1 3x3 conv + GroupNorm + IB channel mask + residual + ReLU."""
    acc = None
    for t in range(9):
        ky, kx = divmod(t, 3)
        q0 = ky * wpad + kx
        a = xf_ref[0, q0:q0 + L, :]
        d = jnp.dot(a, w_ref[t], preferred_element_type=jnp.float32)
        acc = d if acc is None else acc + d
    mask = m_ref[...]
    scale, bias = _gn_affine(acc, mask, gm_ref[...], gmt_ref[...],
                             g_ref[...], b_ref[...], denom, eps)
    ib = s_ref[...]                                              # (1, tn)
    scale = scale * ib
    bias = bias * ib
    y = (acc * scale + bias) * mask + r_ref[0].astype(jnp.float32)
    if relu:
        y = jnp.maximum(y, 0.0)
    o_ref[0] = y.astype(o_ref.dtype)


def _matmul_gn_kernel(a_ref, w_ref, g_ref, b_ref, gm_ref, gmt_ref, o_ref,
                      *, denom, eps, relu):
    """Per-sample matmul fused with GroupNorm (+ReLU).  Used for the stem,
    the stride-2 3x3 convs (pre-built patches) and the 1x1 shortcut convs."""
    acc = jnp.dot(a_ref[0], w_ref[...], preferred_element_type=jnp.float32)
    scale, bias = _gn_affine(acc, None, gm_ref[...], gmt_ref[...],
                             g_ref[...], b_ref[...], denom, eps)
    y = acc * scale + bias
    if relu:
        y = jnp.maximum(y, 0.0)
    o_ref[0] = y.astype(o_ref.dtype)


def _pool_linear_kernel(x_ref, w_ref, b_ref, o_ref):
    x = x_ref[...].astype(jnp.float32)                           # (N, HW, C)
    pooled = jnp.mean(x, axis=1)                                 # (N, C)
    o_ref[...] = jnp.dot(pooled.astype(jnp.bfloat16), w_ref[...],
                         preferred_element_type=jnp.float32) + b_ref[...]


# -----------------------------------------------------------------------------
# Pallas wrappers
# -----------------------------------------------------------------------------
_VMEM_LIMIT = 48 * 1024 * 1024   # safe on v7x (64 MiB physical VMEM)


def conv3x3_gn(xf, h, w, w9, gamma, beta, *, cg, relu,
               ib_scale=None, residual_slab=None):
    """Fused stride-1 3x3 conv + GN [+IB +residual] [+ReLU].

    xf:   (N, (h+2)*(w+2), Cin) bf16  zero-padded, flattened input.
    w9:   (9, Cin, Cout) bf16 prepped weight.
    Returns the conv output in slab layout (N, L, Cout) bf16,
    L = (h-1)*(w+2) + w; garbage rows are zero.
    """
    N = xf.shape[0]
    cin = xf.shape[2]
    cout = w9.shape[2]
    wpad = w + 2
    assert xf.shape[1] == (h + 2) * wpad
    L = (h - 1) * wpad + w
    denom = float(h * w * cg)
    tn = _choose_tn(cout)
    gm, gmt = _group_onehots(tn, cg)
    gt = tn // cg
    mask = _slab_mask(L, wpad, w)
    grid = (cout // tn, N)

    x_spec = pl.BlockSpec((1, xf.shape[1], cin), lambda j, n: (n, 0, 0))
    w_spec = pl.BlockSpec((9, cin, tn), lambda j, n: (0, 0, j))
    v_spec = pl.BlockSpec((1, tn), lambda j, n: (0, j))
    m_spec = pl.BlockSpec((L, 1), lambda j, n: (0, 0))
    gm_spec = pl.BlockSpec((tn, gt), lambda j, n: (0, 0))
    gmt_spec = pl.BlockSpec((gt, tn), lambda j, n: (0, 0))
    o_spec = pl.BlockSpec((1, L, tn), lambda j, n: (n, 0, j))

    common = dict(wpad=wpad, L=L, denom=denom, eps=1e-5, relu=relu)
    if ib_scale is None:
        kernel = functools.partial(_conv3x3_gn_kernel, **common)
        in_specs = [x_spec, w_spec, v_spec, v_spec, m_spec, gm_spec, gmt_spec]
        args = (xf, w9, gamma, beta, mask, gm, gmt)
    else:
        r_spec = pl.BlockSpec((1, L, tn), lambda j, n: (n, 0, j))
        kernel = functools.partial(_conv3x3_gn_ib_res_kernel, **common)
        in_specs = [x_spec, w_spec, v_spec, v_spec, v_spec, r_spec,
                    m_spec, gm_spec, gmt_spec]
        args = (xf, w9, gamma, beta, ib_scale, residual_slab, mask, gm, gmt)

    return pl.pallas_call(
        kernel,
        out_shape=jax.ShapeDtypeStruct((N, L, cout), jnp.bfloat16),
        grid_spec=pltpu.PrefetchScalarGridSpec(
            num_scalar_prefetch=0, grid=grid,
            in_specs=in_specs, out_specs=o_spec),
        compiler_params=pltpu.CompilerParams(
            dimension_semantics=("parallel", "parallel"),
            vmem_limit_bytes=_VMEM_LIMIT),
    )(*args)


def matmul_gn(a3, w2, gamma, beta, *, cg, relu):
    """Fused per-sample matmul + GN [+ReLU].  a3: (N, R, K) bf16, w2: (K, Cout)."""
    a3 = a3.astype(jnp.bfloat16)
    N, R, K = a3.shape
    cout = w2.shape[1]
    tn = _choose_tn(cout)
    gm, gmt = _group_onehots(tn, cg)
    gt = tn // cg
    denom = float(R * cg)
    grid = (cout // tn, N)

    a_spec = pl.BlockSpec((1, R, K), lambda j, n: (n, 0, 0))
    w_spec = pl.BlockSpec((K, tn), lambda j, n: (0, j))
    v_spec = pl.BlockSpec((1, tn), lambda j, n: (0, j))
    gm_spec = pl.BlockSpec((tn, gt), lambda j, n: (0, 0))
    gmt_spec = pl.BlockSpec((gt, tn), lambda j, n: (0, 0))
    o_spec = pl.BlockSpec((1, R, tn), lambda j, n: (n, 0, j))

    kernel = functools.partial(_matmul_gn_kernel, denom=denom, eps=1e-5,
                               relu=relu)
    return pl.pallas_call(
        kernel,
        out_shape=jax.ShapeDtypeStruct((N, R, cout), jnp.bfloat16),
        grid_spec=pltpu.PrefetchScalarGridSpec(
            num_scalar_prefetch=0, grid=grid,
            in_specs=[a_spec, w_spec, v_spec, v_spec, gm_spec, gmt_spec],
            out_specs=o_spec),
        compiler_params=pltpu.CompilerParams(
            dimension_semantics=("parallel", "parallel"),
            vmem_limit_bytes=_VMEM_LIMIT),
    )(a3, w2, gamma, beta, gm, gmt)


def pool_linear(x3, wp, bp, n_out):
    """Global average pool over HW fused with the (lane-padded) classifier."""
    N, HW, C = x3.shape
    Np = wp.shape[1]
    out = pl.pallas_call(
        _pool_linear_kernel,
        out_shape=jax.ShapeDtypeStruct((N, Np), jnp.float32),
        grid_spec=pltpu.PrefetchScalarGridSpec(
            num_scalar_prefetch=0, grid=(1,),
            in_specs=[pl.BlockSpec((N, HW, C), lambda i: (0, 0, 0)),
                      pl.BlockSpec((C, Np), lambda i: (0, 0)),
                      pl.BlockSpec((1, Np), lambda i: (0, 0))],
            out_specs=pl.BlockSpec((N, Np), lambda i: (0, 0))),
    )(x3, wp, bp)
    return out[:, :n_out]


def kld_total(mu, logd):
    # Plain jnp: ~1K elements, not worth a kernel launch (perf review item).
    return 0.5 * jnp.sum(jnp.log1p(mu * mu * jnp.exp(-logd)))


# -----------------------------------------------------------------------------
# XLA-level layout glue (contiguous pads / reshapes / slices, all ~1x traffic)
# -----------------------------------------------------------------------------
def _pad_flat(x4):
    """(N,h,w,C) -> zero-pad 1px border -> (N,(h+2)*(w+2),C)."""
    N, h, w, C = x4.shape
    xp = jnp.pad(x4, ((0, 0), (1, 1), (1, 1), (0, 0)))
    return xp.reshape(N, (h + 2) * (w + 2), C)


def _slab_to_dense4(slab, h, w):
    """Conv slab (N,L,C), L=(h-1)*(w+2)+w  ->  dense (N,h,w,C)."""
    N, L, C = slab.shape
    wpad = w + 2
    full = jnp.pad(slab, ((0, 0), (0, h * wpad - L), (0, 0)))
    return full.reshape(N, h, wpad, C)[:, :, :w, :]


def _dense_to_slab(x3, h, w):
    """Dense (N,h*w,C) -> slab (N,L,C) with zero garbage rows (for residuals)."""
    N, _, C = x3.shape
    wpad = w + 2
    L = (h - 1) * wpad + w
    x4 = x3.reshape(N, h, w, C)
    xw = jnp.pad(x4, ((0, 0), (0, 0), (0, 2), (0, 0))).reshape(N, h * wpad, C)
    return xw[:, :L, :]


def _im2col(x, stride):
    """XLA-level 3x3 patch matrix (used only for the stem and stride-2 convs)."""
    N, H, W, Cin = x.shape
    Ho = (H + 2 - 3) // stride + 1
    Wo = (W + 2 - 3) // stride + 1
    xp = jnp.pad(x, ((0, 0), (1, 1), (1, 1), (0, 0)))
    cols = []
    for ky in range(3):
        for kx in range(3):
            cols.append(xp[:, ky:ky + stride * (Ho - 1) + 1:stride,
                           kx:kx + stride * (Wo - 1) + 1:stride, :])
    return jnp.concatenate(cols, axis=-1)                        # (N,Ho,Wo,9*Cin)


# -----------------------------------------------------------------------------
# Model
# -----------------------------------------------------------------------------
def basic_block_ib(x3, h, w, p):
    """BasicBlock (expansion=1) with IB channel mask.
    x3: dense (N, h*w, cin_pad) bf16 -> dense (N, ho*wo, cout_pad) bf16."""
    N, _, cin_p = x3.shape
    stride = p['stride']
    cout_p = p['planes_pad']
    cg = p['cg']
    ho = (h - 1) // stride + 1
    wo = (w - 1) // stride + 1
    x4 = x3.reshape(N, h, w, cin_p)

    # conv1 + GN1 + ReLU (fused)
    if stride == 1:
        out_slab = conv3x3_gn(_pad_flat(x4), h, w, p['conv1_wp'],
                              p['gn1_g'], p['gn1_b'], cg=cg, relu=True)
        out4 = _slab_to_dense4(out_slab, ho, wo)
    else:
        a = _im2col(x4, stride).reshape(N, ho * wo, 9 * cin_p)
        out4 = matmul_gn(a, p['conv1_wp'], p['gn1_g'], p['gn1_b'],
                         cg=cg, relu=True).reshape(N, ho, wo, cout_p)

    # shortcut (+ its GN, fused) or identity
    if 'sc_wp' in p:
        xs = x4[:, ::stride, ::stride, :].reshape(N, ho * wo, cin_p)
        sc = matmul_gn(xs, p['sc_wp'], p['sc_gn_g'], p['sc_gn_b'],
                       cg=cg, relu=False)
    else:
        sc = x3
    sc_slab = _dense_to_slab(sc, ho, wo)

    # conv2 + GN2 + IB mask + residual + ReLU (fused in one kernel)
    out_slab = conv3x3_gn(_pad_flat(out4), ho, wo, p['conv2_wp'],
                          p['gn2_g'], p['gn2_b'], cg=cg, relu=True,
                          ib_scale=p['ib_scale'], residual_slab=sc_slab)
    out3 = _slab_to_dense4(out_slab, ho, wo).reshape(N, ho * wo, cout_p)
    return out3, ho, wo


def resnet_ib_forward(x_nchw, pp):
    x = jnp.transpose(x_nchw, (0, 2, 3, 1)).astype(jnp.bfloat16)   # NCHW -> NHWC
    N, H, W, _ = x.shape

    # stem: 3x3/s1 conv on 3 channels (tiny) via patches + fused matmul+GN+ReLU
    a = _im2col(x, 1)                                              # (N,H,W,27)
    a = jnp.pad(a, ((0, 0), (0, 0), (0, 0), (0, pp['stem_kpad'] - a.shape[-1])))
    out = matmul_gn(a.reshape(N, H * W, pp['stem_kpad']), pp['conv1_wp'],
                    pp['gn1_g'], pp['gn1_b'], cg=pp['stem_cg'], relu=True)

    h, w = H, W
    for stage in pp['stages']:
        for blk in stage:
            out, h, w = basic_block_ib(out, h, w, blk)

    logits = pool_linear(out, pp['lin_wp'], pp['lin_bp'], pp['num_classes'])
    tot_kl = kld_total(pp['kld_mu'], pp['kld_logd'])
    return logits, tot_kl


# -----------------------------------------------------------------------------
# Parameter init (shapes follow the PyTorch __init__) and one-time prep
# -----------------------------------------------------------------------------
def _conv_init(key, kh, kw, cin, cout):
    fan_in = kh * kw * cin
    return jax.random.normal(key, (kh, kw, cin, cout), jnp.float32) * (2.0 / fan_in) ** 0.5


def init_params(key, num_blocks, num_classes=10):
    keys = iter(jax.random.split(key, 256))
    params = {
        'conv1_w': _conv_init(next(keys), 3, 3, 3, 64),
        'gn1_g': jnp.ones((64,), jnp.float32),
        'gn1_b': jnp.zeros((64,), jnp.float32),
    }
    in_planes = 64
    stages = []
    for planes, nb, first_stride in zip([64, 128, 256, 512], num_blocks,
                                        [1, 2, 2, 2]):
        blocks = []
        for s in [first_stride] + [1] * (nb - 1):
            blk = {
                'stride': s,
                'conv1_w': _conv_init(next(keys), 3, 3, in_planes, planes),
                'gn1_g': jnp.ones((planes,), jnp.float32),
                'gn1_b': jnp.zeros((planes,), jnp.float32),
                'conv2_w': _conv_init(next(keys), 3, 3, planes, planes),
                'gn2_g': jnp.ones((planes,), jnp.float32),
                'gn2_b': jnp.zeros((planes,), jnp.float32),
                'ib_mu': 1.0 + 0.1 * jax.random.normal(next(keys), (planes,), jnp.float32),
                'ib_logd': -1.0 + 0.1 * jax.random.normal(next(keys), (planes,), jnp.float32),
            }
            if s != 1 or in_planes != planes:
                blk['sc_w'] = _conv_init(next(keys), 1, 1, in_planes, planes)
                blk['sc_gn_g'] = jnp.ones((planes,), jnp.float32)
                blk['sc_gn_b'] = jnp.zeros((planes,), jnp.float32)
            blocks.append(blk)
            in_planes = planes
        stages.append(blocks)
    params['stages'] = stages
    params['lin_w'] = 0.01 * jax.random.normal(next(keys), (512, num_classes), jnp.float32)
    params['lin_b'] = jnp.zeros((num_classes,), jnp.float32)
    return params


def _pad_vec(v, cp):
    c = v.shape[0]
    return jnp.zeros((1, cp), jnp.float32).at[0, :c].set(v.astype(jnp.float32))


def _prep_conv3x3(w, cin_pad, cout_pad):
    """(3,3,cin,cout) f32 -> (9, cin_pad, cout_pad) bf16 (zero-padded)."""
    _, _, cin, cout = w.shape
    out = jnp.zeros((9, cin_pad, cout_pad), jnp.bfloat16)
    return out.at[:, :cin, :cout].set(w.reshape(9, cin, cout).astype(jnp.bfloat16))


def _prep_conv3x3_mm(w, cin_pad, cout_pad):
    """(3,3,cin,cout) f32 -> (9*cin_pad, cout_pad) bf16, rows match _im2col order."""
    return _prep_conv3x3(w, cin_pad, cout_pad).reshape(9 * cin_pad, cout_pad)


def _prep_conv1x1_mm(w, cin_pad, cout_pad):
    cin, cout = w.shape[2], w.shape[3]
    out = jnp.zeros((cin_pad, cout_pad), jnp.bfloat16)
    return out.at[:cin, :cout].set(w.reshape(cin, cout).astype(jnp.bfloat16))


def prepare_params(raw, num_classes=10):
    """One-time weight reshape / pad / cast so the forward path does no prep."""
    pp = {'num_classes': num_classes}

    # stem (Cin=3): K = 27 padded to 128, Cout 64 padded to 128
    stem_cout = raw['conv1_w'].shape[-1]
    stem_cp = _cpad(stem_cout)
    stem_kpad = 128
    w27 = raw['conv1_w'].reshape(27, stem_cout).astype(jnp.bfloat16)
    pp['conv1_wp'] = jnp.zeros((stem_kpad, stem_cp), jnp.bfloat16
                               ).at[:27, :stem_cout].set(w27)
    pp['stem_kpad'] = stem_kpad
    pp['gn1_g'] = _pad_vec(raw['gn1_g'], stem_cp)
    pp['gn1_b'] = _pad_vec(raw['gn1_b'], stem_cp)
    pp['stem_cg'] = stem_cout // 32

    stages = []
    for st in raw['stages']:
        blocks = []
        for b in st:
            cin = b['conv1_w'].shape[2]
            planes = b['conv1_w'].shape[3]
            cin_p, cout_p = _cpad(cin), _cpad(planes)
            nb = {
                'stride': b['stride'],
                'planes_pad': cout_p,
                'cg': planes // 32,
                'gn1_g': _pad_vec(b['gn1_g'], cout_p),
                'gn1_b': _pad_vec(b['gn1_b'], cout_p),
                'gn2_g': _pad_vec(b['gn2_g'], cout_p),
                'gn2_b': _pad_vec(b['gn2_b'], cout_p),
                'ib_scale': _pad_vec(b['ib_mu'], cout_p),
                'conv2_wp': _prep_conv3x3(b['conv2_w'], cout_p, cout_p),
            }
            if b['stride'] == 1:
                nb['conv1_wp'] = _prep_conv3x3(b['conv1_w'], cin_p, cout_p)
            else:
                nb['conv1_wp'] = _prep_conv3x3_mm(b['conv1_w'], cin_p, cout_p)
            if 'sc_w' in b:
                nb['sc_wp'] = _prep_conv1x1_mm(b['sc_w'], cin_p, cout_p)
                nb['sc_gn_g'] = _pad_vec(b['sc_gn_g'], cout_p)
                nb['sc_gn_b'] = _pad_vec(b['sc_gn_b'], cout_p)
            blocks.append(nb)
        stages.append(blocks)
    pp['stages'] = stages

    # classifier: classes padded to 128 lanes (lane-dense store), sliced at end
    C = raw['lin_w'].shape[0]
    Np = _round_up(num_classes, 128)
    pp['lin_wp'] = jnp.zeros((C, Np), jnp.bfloat16).at[:, :num_classes].set(
        raw['lin_w'].astype(jnp.bfloat16))
    pp['lin_bp'] = jnp.zeros((1, Np), jnp.float32).at[0, :num_classes].set(raw['lin_b'])

    # IB parameters for the (plain-jnp) KLD term
    pp['kld_mu'] = jnp.concatenate([b['ib_mu'] for st in raw['stages'] for b in st])
    pp['kld_logd'] = jnp.concatenate([b['ib_logd'] for st in raw['stages'] for b in st])
    return pp


# -----------------------------------------------------------------------------
if __name__ == "__main__":
    key = jax.random.PRNGKey(0)
    raw_params = init_params(key, num_blocks=[1, 1, 1, 1], num_classes=10)
    params = prepare_params(raw_params, num_classes=10)
    x = jax.random.normal(jax.random.fold_in(key, 999), (2, 3, 16, 16), jnp.float32)

    logits, tot_kl = resnet_ib_forward(x, params)
    jax.block_until_ready((logits, tot_kl))

    assert logits.shape == (2, 10) and logits.dtype == jnp.float32
    assert tot_kl.shape == () and bool(jnp.isfinite(tot_kl))
    assert bool(jnp.all(jnp.isfinite(logits)))
    print("KERNEL_OK")
</pallas_src>

<mosaic_0001>
module attributes {stable_mosaic.version = 11 : i64} {
  func.func @_matmul_gn_kernel(%arg0: i32, %arg1: i32, %arg2: memref<1x256x128xbf16, #tpu.memory_space<vmem>>, %arg3: memref<128x128xbf16, #tpu.memory_space<vmem>>, %arg4: memref<1x128xf32, #tpu.memory_space<vmem>>, %arg5: memref<1x128xf32, #tpu.memory_space<vmem>>, %arg6: memref<128x64xf32, #tpu.memory_space<vmem>>, %arg7: memref<64x128xf32, #tpu.memory_space<vmem>>, %arg8: memref<1x256x128xbf16, #tpu.memory_space<vmem>>) attributes {dimension_semantics = [#tpu.dimension_semantics<parallel>, #tpu.dimension_semantics<parallel>], iteration_bounds = array<i64: 1, 2>, scalar_prefetch = 0 : i64, scratch_operands = 0 : i64, tpu.core_type = #tpu.core_type<tc>, window_params = [{transform_indices = @transform_0, window_bounds = array<i64: 1, 256, 128>}, {transform_indices = @transform_1, window_bounds = array<i64: 128, 128>}, {transform_indices = @transform_2, window_bounds = array<i64: 1, 128>}, {transform_indices = @transform_3, window_bounds = array<i64: 1, 128>}, {pipeline_mode = #tpu.pipeline_mode<synchronous>, transform_indices = @transform_4, window_bounds = array<i64: 128, 64>}, {pipeline_mode = #tpu.pipeline_mode<synchronous>, transform_indices = @transform_5, window_bounds = array<i64: 64, 128>}, {transform_indices = @transform_6, window_bounds = array<i64: 1, 256, 128>}]} {
    %c0 = arith.constant 0 : index
    %c0_0 = arith.constant 0 : index
    %c0_1 = arith.constant 0 : index
    %0 = vector.load %arg2[%c0, %c0_0, %c0_1] : memref<1x256x128xbf16, #tpu.memory_space<vmem>>, vector<1x256x128xbf16>
    %1 = vector.shape_cast %0 : vector<1x256x128xbf16> to vector<256x128xbf16>
    %c0_2 = arith.constant 0 : index
    %c0_3 = arith.constant 0 : index
    %2 = vector.load %arg3[%c0_2, %c0_3] : memref<128x128xbf16, #tpu.memory_space<vmem>>, vector<128x128xbf16>
    %cst = arith.constant dense<0.000000e+00> : vector<256x128xf32>
    %3 = tpu.matmul %1, %2, %cst {dimension_numbers = #tpu.dot_dimension_numbers<[1], [0], [0], [1], [0, 0, 1, 1], [], []>} : vector<256x128xbf16>, vector<128x128xbf16>, vector<256x128xf32> -> vector<256x128xf32>
    %c0_4 = arith.constant 0 : index
    %c0_5 = arith.constant 0 : index
    %4 = vector.load %arg6[%c0_4, %c0_5] : memref<128x64xf32, #tpu.memory_space<vmem>>, vector<128x64xf32>
    %c0_6 = arith.constant 0 : index
    %c0_7 = arith.constant 0 : index
    %5 = vector.load %arg7[%c0_6, %c0_7] : memref<64x128xf32, #tpu.memory_space<vmem>>, vector<64x128xf32>
    %c0_8 = arith.constant 0 : index
    %c0_9 = arith.constant 0 : index
    %6 = vector.load %arg4[%c0_8, %c0_9] : memref<1x128xf32, #tpu.memory_space<vmem>>, vector<1x128xf32>
    %c0_10 = arith.constant 0 : index
    %c0_11 = arith.constant 0 : index
    %7 = vector.load %arg5[%c0_10, %c0_11] : memref<1x128xf32, #tpu.memory_space<vmem>>, vector<1x128xf32>
    %cst_12 = arith.constant dense<0.000000e+00> : vector<128xf32>
    %8 = vector.multi_reduction <add>, %3, %cst_12 [0] : vector<256x128xf32> to vector<128xf32>
    %9 = vector.shape_cast %8 : vector<128xf32> to vector<1x128xf32>
    %10 = arith.mulf %3, %3 : vector<256x128xf32>
    %cst_13 = arith.constant dense<0.000000e+00> : vector<128xf32>
    %11 = vector.multi_reduction <add>, %10, %cst_13 [0] : vector<256x128xf32> to vector<128xf32>
    %12 = vector.shape_cast %11 : vector<128xf32> to vector<1x128xf32>
    %13 = tpu.concatenate %9, %12 in 0 : vector<1x128xf32>, vector<1x128xf32> -> vector<2x128xf32>
    %cst_14 = arith.constant dense<0.000000e+00> : vector<2x64xf32>
    %14 = tpu.matmul %13, %4, %cst_14 {dimension_numbers = #tpu.dot_dimension_numbers<[1], [0], [0], [1], [0, 0, 1, 1], [], []>} : vector<2x128xf32>, vector<128x64xf32>, vector<2x64xf32> -> vector<2x64xf32>
    %15 = vector.extract_strided_slice %14 {offsets = [0, 0], sizes = [1, 64], strides = [1, 1]} : vector<2x64xf32> to vector<1x64xf32>
    %cst_15 = arith.constant 0.001953125 : f32
    %16 = vector.broadcast %cst_15 : f32 to vector<1x64xf32>
    %17 = arith.mulf %15, %16 : vector<1x64xf32>
    %18 = vector.extract_strided_slice %14 {offsets = [1, 0], sizes = [1, 64], strides = [1, 1]} : vector<2x64xf32> to vector<1x64xf32>
    %cst_16 = arith.constant 0.001953125 : f32
    %19 = vector.broadcast %cst_16 : f32 to vector<1x64xf32>
    %20 = arith.mulf %18, %19 : vector<1x64xf32>
    %21 = arith.mulf %17, %17 : vector<1x64xf32>
    %22 = arith.subf %20, %21 : vector<1x64xf32>
    %cst_17 = arith.constant 0.000000e+00 : f32
    %23 = vector.broadcast %cst_17 : f32 to vector<1x64xf32>
    %24 = arith.maximumf %22, %23 : vector<1x64xf32>
    %cst_18 = arith.constant 9.99999974E-6 : f32
    %25 = vector.broadcast %cst_18 : f32 to vector<1x64xf32>
    %26 = arith.addf %24, %25 : vector<1x64xf32>
    %27 = math.rsqrt %26 : vector<1x64xf32>
    %28 = tpu.concatenate %17, %27 in 0 : vector<1x64xf32>, vector<1x64xf32> -> vector<2x64xf32>
    %cst_19 = arith.constant dense<0.000000e+00> : vector<2x128xf32>
    %29 = tpu.matmul %28, %5, %cst_19 {dimension_numbers = #tpu.dot_dimension_numbers<[1], [0], [0], [1], [0, 0, 1, 1], [], []>} : vector<2x64xf32>, vector<64x128xf32>, vector<2x128xf32> -> vector<2x128xf32>
    %30 = vector.extract_strided_slice %29 {offsets = [1, 0], sizes = [1, 128], strides = [1, 1]} : vector<2x128xf32> to vector<1x128xf32>
    %31 = arith.mulf %30, %6 : vector<1x128xf32>
    %32 = vector.extract_strided_slice %29 {offsets = [0, 0], sizes = [1, 128], strides = [1, 1]} : vector<2x128xf32> to vector<1x128xf32>
    %33 = arith.mulf %32, %31 : vector<1x128xf32>
    %34 = arith.subf %7, %33 : vector<1x128xf32>
    %35 = vector.broadcast %31 : vector<1x128xf32> to vector<256x128xf32>
    %36 = arith.mulf %3, %35 : vector<256x128xf32>
    %37 = vector.broadcast %34 : vector<1x128xf32> to vector<256x128xf32>
    %38 = arith.addf %36, %37 : vector<256x128xf32>
    %cst_20 = arith.constant 0.000000e+00 : f32
    %39 = vector.broadcast %cst_20 : f32 to vector<256x128xf32>
    %40 = arith.maximumf %38, %39 : vector<256x128xf32>
    %41 = arith.truncf %40 : vector<256x128xf32> to vector<256x128xbf16>
    %c0_21 = arith.constant 0 : index
    %c0_22 = arith.constant 0 : index
    %c0_23 = arith.constant 0 : index
    %42 = vector.load %arg8[%c0_21, %c0_22, %c0_23] : memref<1x256x128xbf16, #tpu.memory_space<vmem>>, vector<1x256x128xbf16>
    %43 = vector.shape_cast %42 : vector<1x256x128xbf16> to vector<256x128xbf16>
    %44 = vector.shape_cast %41 : vector<256x128xbf16> to vector<1x256x128xbf16>
    tpu.vector_store %arg8[%c0_21, %c0_22, %c0_23], %44 {strides = array<i32>} : memref<1x256x128xbf16, #tpu.memory_space<vmem>>, vector<1x256x128xbf16>,
    return
  }
  func.func @transform_0(%arg0: i32, %arg1: i32) -> (i32, i32, i32) {
    %c0_i32 = arith.constant 0 : i32
    %c0_i32_0 = arith.constant 0 : i32
    %c0_i32_1 = arith.constant 0 : i32
    return %arg1, %c0_i32, %c0_i32_0 : i32, i32, i32
  }
  func.func @transform_1(%arg0: i32, %arg1: i32) -> (i32, i32) {
    %c0_i32 = arith.constant 0 : i32
    %c0_i32_0 = arith.constant 0 : i32
    return %c0_i32, %arg0 : i32, i32
  }
  func.func @transform_2(%arg0: i32, %arg1: i32) -> (i32, i32) {
    %c0_i32 = arith.constant 0 : i32
    %c0_i32_0 = arith.constant 0 : i32
    return %c0_i32, %arg0 : i32, i32
  }
  func.func @transform_3(%arg0: i32, %arg1: i32) -> (i32, i32) {
    %c0_i32 = arith.constant 0 : i32
    %c0_i32_0 = arith.constant 0 : i32
    return %c0_i32, %arg0 : i32, i32
  }
  func.func @transform_4(%arg0: i32, %arg1: i32) -> (i32, i32) {
    %c0_i32 = arith.constant 0 : i32
    %c0_i32_0 = arith.constant 0 : i32
    %c0_i32_1 = arith.constant 0 : i32
    return %c0_i32, %c0_i32_0 : i32, i32
  }
  func.func @transform_5(%arg0: i32, %arg1: i32) -> (i32, i32) {
    %c0_i32 = arith.constant 0 : i32
    %c0_i32_0 = arith.constant 0 : i32
    %c0_i32_1 = arith.constant 0 : i32
    return %c0_i32, %c0_i32_0 : i32, i32
  }
  func.func @transform_6(%arg0: i32, %arg1: i32) -> (i32, i32, i32) {
    %c0_i32 = arith.constant 0 : i32
    %c0_i32_0 = arith.constant 0 : i32
    return %arg1, %c0_i32, %arg0 : i32, i32, i32
  }
}

</mosaic_0001>

<bundles_post_ra>
// kernel: tpu_custom_call.1
= control target key start
LH: loop header
LB: loop body
LE: loop exit
PB: predicated region body
PF: predicated region fallthrough
CT: control target
= control target key end

     0   :  { %11 = vsyncpa [#allocation3], 0  ;;  %s2567_s0 = inlined_call_operand.hbm [shape: bf16[2,256,128], index: 0, kind: input, shape index: {}]   ;;  %s2568_s1 = inlined_call_operand.vmem [shape: bf16[128,128], index: 1, kind: input, shape index: {}]   ;;  %s2569_s2 = inlined_call_operand.vmem [shape: f32[1,128], index: 2, kind: input, shape index: {}]   ;;  %s2570_s3 = inlined_call_operand.vmem [shape: f32[1,128], index: 3, kind: input, shape index: {}]   ;;  %s2571_s4 = inlined_call_operand.vmem [shape: f32[128,64], index: 4, kind: input, shape index: {}]   ;;  %s2572_s5 = inlined_call_operand.vmem [shape: f32[64,128], index: 5, kind: input, shape index: {}]   ;;  %s2573_s6 = inlined_call_operand.hbm [shape: bf16[2,256,128], index: 6, kind: output, shape index: {}]  }
   0x1   :  { %13 = vsyncpa [#allocation3 + $0x1], 0 }
   0x2   :  { %14 = vsyncpa [#allocation4], 0 }
   0x3   :  { %16 = vsyncpa [#allocation4 + $0x1], 0  ;;  %s1990_s21 = smov 0   ;;  %s1992_s22 = smov 0  }
   0x4   :  { %s1994_s23 = smov 0   ;;  %s1996_s24 = smov 0  }
   0x5   :  { %s1998_s25 = smov 0   ;;  %s2000_s26 = smov 0  }
   0x6 LB: > { %s1386_s27 = sadd.s32 4294967295, %s1945_s26   ;;  %s1387_s28 = sadd.s32 4294967294, %s1945_s26   ;;  %s1945_s26 = sphi %s2000_s26, %s22_s26   ;;  %s1941_s25 = sphi %s1998_s25, %s2584_s25   ;;  %s1937_s24 = sphi %s1996_s24, %s2583_s24   ;;  %s1933_s23 = sphi %s1994_s23, %s2582_s23   ;;  %s1929_s22 = sphi %s1992_s22, %s2581_s22   ;;  %s1925_s21 = sphi %s1990_s21, %s2580_s21  }
   0x7   : > { %s31_s29 = sadd.s32 1, %s1941_s25  ;;  %s41_s30 = sadd.s32 1, %s1933_s23 }
   0x8   : > { %p32_p0 = scmp.ge.s32.totalorder %s31_s29, 2  ;;  %p48_p1 = scmp.ne.s32.totalorder %s1933_s23, %s1929_s22 }
   0x9   : > { %p49_p2 = scmp.eq.s32.totalorder %s1945_s26, 0  ;;  %p54_p3 = scmp.ne.s32.totalorder %s1929_s22, %s1925_s21 }
   0xa   : > { %s2586_s29 = smov (%p32_p0, %s31_s29), 0  ;;  %p55_p5 = scmp.eq.s32.totalorder %s1386_s27, 0 }
   0xb   : > { %p2031_p4 = por %p49_p2, %p48_p1  ;;  %s38_s8 = ssub.s32 %s1941_s25, %s2586_s29 }
   0xc   : > { %p200_p6 = scmp.eq.s32.totalorder %s1386_s27, 1  ;;  %p39_p7 = scmp.eq.s32.totalorder %s38_s8, 0 }
   0xd   : > { %p2037_p8 = por %p55_p5, %p54_p3  ;;  %p206_p10 = scmp.eq.s32.totalorder %s1387_s28, 1 }
   0xe   : > { %p2041_p9 = por %p200_p6, %p48_p1  ;;  %p1755_p13 = scmp.lt.s32.totalorder %s1945_s26, 2 }
   0xf   : > { %s2046_s11 = scalar_select %p39_p7, %s1933_s23, %s41_s30  }
  0x10   : > { %p2048_p11 = por %p206_p10, %p54_p3  ;;  %s251_s13 = sand.u32 1, %s1933_s23  }
  0x11   : > { %s1393_s14 = sshll.u32 %s251_s13, 7  ;;  %s1462_s15 = sshll.u32 %s1941_s25, 11 }
  0x12   : > { %s261_s18 = scalar_lea.hbm %s2567_s0, %s1462_s15  ;;  %s255_s19 = scalar_lea.vmem [#allocation2], %s1393_s14 }
  0x13   : > { %s262_s20 = sshll.u32 %s255_s19, 4  ;;  %p2061_p0 = pnand %p1755_p13, %p2031_p4  ;;  %s263_s20 = int_to_ptr.vmem [resolvable:$true] %s262_s20 }
  0x14   : > { %p1396_p1 = scmp.ge.s32.totalorder %s1945_s26, 1  ;;  %s252_s28 = scalar_lea.sflag [#allocation3], %s251_s13 }
  0x15   : > { %p1839_p2 = pneg %p2061_p0  ;;  %s1850_s30 = scalar_lea.vmem %s263_s20, 2048 }
  0x16   : > { %p1851_p3 = scmp.ne.s32.totalorder %s263_s20, %s1850_s30  ;;  %s1947_s8 = smov [#allocation2]  }
  0x17   : > { %s1855_s16 = sshll.u32 %s1947_s8, 4  ;;  %s1856_s16 = int_to_ptr.vmem [resolvable:$false] %s1855_s16 }
  0x18   : > { %p1853_p5 = pnand %p1851_p3, %p1839_p2  ;;  %s1857_s14 = scalar_lea.vmem %s1856_s16, 4096 }
  0x19   : > { %p1858_p7 = scmp.lt.s32.totalorder %s263_s20, %s1856_s16  ;;  %p1859_p10 = scmp.lt.s32.totalorder %s1857_s14, %s1850_s30 }
  0x1a   : > { %p1854_p6 = pneg %p1853_p5 }
  0x1b   : > { %p1860_p12 = por %p1859_p10, %p1858_p7 }
  0x1d   : > { %p1861_p4 = pnand %p1860_p12, %p1854_p6 }
  0x1f   : > { %1864 = shalt.err (!%p1861_p4)
}
  0x20   : > { %s1948_s7 = smov 64   ;;  %s1949_s13 = smov 4  }
  0x21   : > { %1750 = dma.hbm_to_vmem [thread:$0]  (!%p2061_p0), %s261_s18, 2048, %s263_s20, %s252_s28, %s1948_s7, %s1948_s7, %s1949_s13  }
  0x22   : > { %p270_p13 = scmp.lt.s32.totalorder %s1945_s26, 3 }
  0x24   : > { %p271_p2 = pnand %p1396_p1, %p270_p13 }
  0x25   : > { %s2074_s15 = sand.u32 (!%p271_p2), 1, %s1929_s22  }
  0x26   : > { %274 = sbr.rel (%p271_p2) target bundleno = 818 (0x332), region = 44  ;;  %s1397_s17 = sshll.u32 (!%p271_p2), %s2074_s15, 7 }
  0x27   : > { %s277_s19 = scalar_lea.sflag (!%p271_p2), [#allocation3], %s2074_s15  ;;  %s2080_s30 = scalar_lea.vmem (!%p271_p2), [#allocation2], %s1397_s17 }
  0x2b   : > { %1916 = dma.done.wait (%p2037_p8), %s277_s19, 2048  }
  0x2c   : > { %1918 = vsyncadd (%p2037_p8), %s277_s19, 4294965248  ;;  %v1811_v0 = vld [vmem:[%s2568_s1 + $0x38] sm:$0xff]   ;;  %v1812_v1 = vld [vmem:[%s2568_s1 + $0x30] sm:$0xff]   ;;  %v1950_v24 = vmov 0.0   ;;  %vm1951_vm0 = vmmov 0   ;;  %vm815_vm1 = vcmask 1040384  }
  0x2d   : > { %1641 = vmatprep.subr.bf16.mxu0 %v1811_v0  ;;  %v1813_v2 = vld [vmem:[%s2568_s1 + $0x28] sm:$0xff]   ;;  %v1814_v3 = vld [vmem:[%s2568_s1 + $0x20] sm:$0xff]   ;;  %v1815_v5 = vld [vmem:[%s2568_s1 + $0x18] sm:$0xff]   ;;  %1689 = vmatprep.subr.mxu1 %v1950_v24  ;;  %vm897_vm2 = vcmask 523264   ;;  %s1495_s13 = sshll.u32 %s1937_s24, 11  ;;  %s1250_s20 = scalar_lea.sflag [#allocation4], %s2074_s15 }
  0x2e   : > { %1642 = vmatpush3.bf16.msra.mxu0 %v1811_v0  ;;  %v1819_v4 = vld [vmem:[%s2080_s30] sm:$0xff]   ;;  %v1816_v6 = vld [vmem:[%s2568_s1 + $0x10] sm:$0xff]   ;;  %v1817_v7 = vld [vmem:[%s2568_s1 + $0x8] sm:$0xff]   ;;  %1721 = vmatprep.mubr.msk.f32.mxu1 %vm1951_vm0, %v1950_v24  ;;  %s2506_s18 = scalar_lea.hbm %s2573_s6, %s1495_s13  ;;  %s1952_s28 = smov [#allocation5]  }
  0x2f   : > { %1643 = vmatprep.subr.bf16.mxu0 %v1812_v1  ;;  %1657 = vmatprep.mubr.bf16.mxu0 %v1819_v4  ;;  %v1818_v8 = vld [vmem:[%s2568_s1] sm:$0xff]   ;;  %v1820_v9 = vld [vmem:[%s2080_s30 + $0x8] sm:$0xff]   ;;  %v1821_v10 = vld [vmem:[%s2080_s30 + $0x10] sm:$0xff]   ;;  %s1869_s8 = sshll.u32 %s1952_s28, 4  ;;  %s1870_s8 = int_to_ptr.vmem [resolvable:$false] %s1869_s8 }
  0x30   : > { %v1822_v11 = vld [vmem:[%s2080_s30 + $0x18] sm:$0xff]   ;;  %v1823_v12 = vld [vmem:[%s2080_s30 + $0x20] sm:$0xff]   ;;  %v1824_v13 = vld [vmem:[%s2080_s30 + $0x28] sm:$0xff]   ;;  %s1871_s16 = scalar_lea.vmem %s1870_s8, 4096 }
  0x31   : > { %v1825_v14 = vld [vmem:[%s2080_s30 + $0x30] sm:$0xff]   ;;  %v1826_v15 = vld [vmem:[%s2080_s30 + $0x38] sm:$0xff]   ;;  %v1827_v16 = vld [vmem:[%s2080_s30 + $0x40] sm:$0xff]  }
  0x32   : > { %1644 = vmatpush3.bf16.msra.mxu0 %v1812_v1  ;;  %v1828_v17 = vld [vmem:[%s2080_s30 + $0x48] sm:$0xff]   ;;  %v1829_v18 = vld [vmem:[%s2080_s30 + $0x50] sm:$0xff]   ;;  %v1830_v19 = vld [vmem:[%s2080_s30 + $0x58] sm:$0xff]  }
  0x33   : > { %1645 = vmatprep.subr.bf16.mxu0 %v1813_v2  ;;  %v1831_v20 = vld [vmem:[%s2080_s30 + $0x60] sm:$0xff]   ;;  %v1832_v21 = vld [vmem:[%s2080_s30 + $0x68] sm:$0xff]   ;;  %v1833_v22 = vld [vmem:[%s2080_s30 + $0x70] sm:$0xff]  }
  0x34   : > { %v1834_v23 = vld [vmem:[%s2080_s30 + $0x78] sm:$0xff]   ;;  %v697_v26 = vld [vmem:[%s2571_s4 + $0x70] sm:$0xff]  ;;  %v696_v27 = vld [vmem:[%s2571_s4 + $0x68] sm:$0xff]  ;;  %s2495_s30 = scalar_lea.vmem [#allocation5], %s1397_s17 }
  0x35   : > { %v698_v25 = vld [vmem:[%s2571_s4 + $0x78] sm:$0xff]  ;;  %v695_v28 = vld [vmem:[%s2571_s4 + $0x60] sm:$0xff]  ;;  %v693_v30 = vld [vmem:[%s2571_s4 + $0x50] sm:$0xff]  ;;  %s1264_s19 = sshll.u32 %s2495_s30, 4  ;;  %s2508_s19 = int_to_ptr.vmem [resolvable:$true] %s1264_s19 }
  0x36   : > { %1646 = vmatpush3.bf16.msra.mxu0 %v1813_v2  ;;  %1690 = vmatpush3.msra.mxu1 %v698_v25  ;;  %v694_v29 = vld [vmem:[%s2571_s4 + $0x58] sm:$0xff]  ;;  %v692_v31 = vld [vmem:[%s2571_s4 + $0x48] sm:$0xff]  ;;  %v691_v32 = vld [vmem:[%s2571_s4 + $0x40] sm:$0xff]  ;;  %s1865_s27 = scalar_lea.vmem %s2508_s19, 2048  ;;  %p1872_p1 = scmp.lt.s32.totalorder %s2508_s19, %s1870_s8 }
  0x37   : > { %1647 = vmatprep.subr.bf16.mxu0 %v1814_v3  ;;  %1691 = vmatprep.subr.mxu1 %v1950_v24  ;;  %v690_v33 = vld [vmem:[%s2571_s4 + $0x38] sm:$0xff]  ;;  %v689_v34 = vld [vmem:[%s2571_s4 + $0x30] sm:$0xff]  ;;  %v688_v35 = vld [vmem:[%s2571_s4 + $0x28] sm:$0xff]  ;;  %p1866_p8 = scmp.ne.s32.totalorder %s2508_s19, %s1865_s27  ;;  %p1873_p3 = scmp.lt.s32.totalorder %s1871_s16, %s1865_s27 }
  0x38   : > { %1692 = vmatpush3.msra.mxu1 %v697_v26  ;;  %v687_v36 = vld [vmem:[%s2571_s4 + $0x20] sm:$0xff]  ;;  %v686_v37 = vld [vmem:[%s2571_s4 + $0x18] sm:$0xff]  ;;  %v685_v38 = vld [vmem:[%s2571_s4 + $0x10] sm:$0xff] }
  0x39   : > { %1693 = vmatprep.subr.mxu1 %v1950_v24  ;;  %v684_v39 = vld [vmem:[%s2571_s4 + $0x8] sm:$0xff]  ;;  %v683_v40 = vld [vmem:[%s2571_s4] sm:$0xff]  ;;  %p1867_p12 = pnand %p1866_p8, %p2041_p9  ;;  %p1874_p5 = por %p1873_p3, %p1872_p1 }
  0x3a   : > { %1648 = vmatpush3.bf16.msra.mxu0 %v1814_v3  ;;  %1694 = vmatpush3.msra.mxu1 %v696_v27 }
  0x3b   : > { %1649 = vmatprep.subr.bf16.mxu0 %v1815_v5  ;;  %1695 = vmatprep.subr.mxu1 %v1950_v24  ;;  %p1868_p0 = pneg %p1867_p12 }
  0x3c   : > { %1696 = vmatpush3.msra.mxu1 %v695_v28 }
  0x3d   : > { %1697 = vmatprep.subr.mxu1 %v1950_v24  ;;  %p1875_p6 = pnand %p1874_p5, %p1868_p0 }
  0x3e   : > { %1650 = vmatpush3.bf16.msra.mxu0 %v1815_v5  ;;  %1698 = vmatpush3.msra.mxu1 %v694_v29 }
  0x3f   : > { %1651 = vmatprep.subr.bf16.mxu0 %v1816_v6  ;;  %1699 = vmatprep.subr.mxu1 %v1950_v24 }
  0x40   : > { %1700 = vmatpush3.msra.mxu1 %v693_v30 }
  0x41   : > { %1701 = vmatprep.subr.mxu1 %v1950_v24 }
  0x42   : > { %1652 = vmatpush3.bf16.msra.mxu0 %v1816_v6  ;;  %1702 = vmatpush3.msra.mxu1 %v692_v31 }
  0x43   : > { %1653 = vmatprep.subr.bf16.mxu0 %v1817_v7  ;;  %1703 = vmatprep.subr.mxu1 %v1950_v24 }
  0x44   : > { %1704 = vmatpush3.msra.mxu1 %v691_v32 }
  0x45   : > { %1705 = vmatprep.subr.mxu1 %v1950_v24 }
  0x46   : > { %1654 = vmatpush3.bf16.msra.mxu0 %v1817_v7  ;;  %1706 = vmatpush3.msra.mxu1 %v690_v33 }
  0x47   : > { %1655 = vmatprep.subr.bf16.mxu0 %v1818_v8  ;;  %1707 = vmatprep.subr.mxu1 %v1950_v24 }
  0x48   : > { %1708 = vmatpush3.msra.mxu1 %v689_v34 }
  0x49   : > { %1709 = vmatprep.subr.mxu1 %v1950_v24 }
  0x4a   : > { %1656 = vmatpush3.bf16.msra.mxu0 %v1818_v8  ;;  %1710 = vmatpush3.msra.mxu1 %v688_v35 }
  0x4b   : > { %1711 = vmatprep.subr.mxu1 %v1950_v24 }
  0x4c   : > { %1712 = vmatpush3.msra.mxu1 %v687_v36 }
  0x4d   : > { %1658 = vmatmul.mubr.bf16.vlgmr.msra.gmra.mxu0 %v1820_v9  ;;  %1713 = vmatprep.subr.mxu1 %v1950_v24 }
  0x4e   : > { %1661 = vmatprep.mubr.bf16.mxu0 %v1821_v10  ;;  %1714 = vmatpush3.msra.mxu1 %v686_v37 }
  0x4f   : > { %1715 = vmatprep.subr.mxu1 %v1950_v24 }
  0x50   : > { %1716 = vmatpush3.msra.mxu1 %v685_v38 }
  0x51   : > { %1717 = vmatprep.subr.mxu1 %v1950_v24 }
  0x52   : > { %1718 = vmatpush3.msra.mxu1 %v684_v39 }
  0x53   : > { %1719 = vmatprep.subr.mxu1 %v1950_v24 }
  0x54   : > { %1720 = vmatpush3.msra.mxu1 %v683_v40 }
  0x55   : > { %1662 = vmatmul.mubr.bf16.gmra.mxu0 %v1822_v11  ;;  %1724 = vmatprep.subr.mxu1 %v1950_v24 }
  0x56   : > { %1665 = vmatprep.mubr.bf16.mxu0 %v1823_v12 }
  0x5d   : > { %1666 = vmatmul.mubr.bf16.gmra.mxu0 %v1824_v13 }
  0x5e   : > { %1669 = vmatprep.mubr.bf16.mxu0 %v1825_v14 }
  0x65   : > { %1670 = vmatmul.mubr.bf16.gmra.mxu0 %v1826_v15 }
  0x66   : > { %1673 = vmatprep.mubr.bf16.mxu0 %v1827_v16 }
  0x6d   : > { %1674 = vmatmul.mubr.bf16.gmra.mxu0 %v1828_v17 }
  0x6e   : > { %1677 = vmatprep.mubr.bf16.mxu0 %v1829_v18 }
  0x75   : > { %1678 = vmatmul.mubr.bf16.gmra.mxu0 %v1830_v19 }
  0x76   : > { %1681 = vmatprep.mubr.bf16.mxu0 %v1831_v20 }
  0x7d   : > { %1682 = vmatmul.mubr.bf16.gmra.mxu0 %v1832_v21 }
  0x7e   : > { %1685 = vmatprep.mubr.bf16.mxu0 %v1833_v22 }
  0x85   : > { %1686 = vmatmul.mubr.bf16.gmra.mxu0 %v1834_v23 }
 0x10d   : > { %v2193_v41 = vpop.f32.mrf.mxu0 }
 0x10e   : > { %v748_v49 = vmul.f32 %v2193_v41, %v2193_v41 }
 0x10f   : > { %v2195_v42 = vpop.f32.mrf.mxu0 }
 0x110   : > { %v746_v45 = vmul.f32 %v2195_v42, %v2195_v42 }
 0x111   : > { %v2197_v43 = vpop.f32.mrf.mxu0 }
 0x112   : > { %v749_v53 = vmul.f32 %v2197_v43, %v2197_v43 }
 0x113   : > { %v2199_v44 = vpop.f32.mrf.mxu0 }
 0x114   : > { %v709_v46 = vadd.f32 %v2199_v44, %v2195_v42  ;;  %v747_v47 = vmul.f32 %v2199_v44, %v2199_v44 }
 0x115   : > { %v2207_v48 = vpop.f32.mrf.mxu0 }
 0x116   : > { %v710_v50 = vadd.f32 %v2193_v41, %v709_v46  ;;  %v778_v51 = vadd.f32 %v747_v47, %v746_v45  ;;  %v752_v1 = vmul.f32 %v2207_v48, %v2207_v48 }
 0x117   : > { %v2212_v52 = vpop.f32.mrf.mxu0 }
 0x118   : > { %v779_v54 = vadd.f32 %v778_v51, %v748_v49  ;;  %v711_v55 = vadd.f32 %v2197_v43, %v710_v50  ;;  %v750_v58 = vmul.f32 %v2212_v52, %v2212_v52 }
 0x119   : > { %v2217_v56 = vpop.f32.mrf.mxu0 }
 0x11a   : > { %v712_v57 = vadd.f32 %v711_v55, %v2212_v52  ;;  %v780_v59 = vadd.f32 %v779_v54, %v749_v53  ;;  %v753_v5 = vmul.f32 %v2217_v56, %v2217_v56 }
 0x11b   : > { %v2222_v60 = vpop.f32.mrf.mxu0 }
 0x11c   : > { %v781_v61 = vadd.f32 %v780_v59, %v750_v58  ;;  %v713_v62 = vadd.f32 %v712_v57, %v2222_v60  ;;  %v751_v63 = vmul.f32 %v2222_v60, %v2222_v60 }
 0x11d   : > { %v2227_v0 = vpop.f32.mrf.mxu0 }
 0x11e   : > { %v714_v2 = vadd.f32 %v2207_v48, %v713_v62  ;;  %v782_v3 = vadd.f32 %v781_v61, %v751_v63  ;;  %v756_v17 = vmul.f32 %v2227_v0, %v2227_v0 }
 0x11f   : > { %v2232_v4 = vpop.f32.mrf.mxu0 }
 0x120   : > { %v783_v6 = vadd.f32 %v782_v3, %v752_v1  ;;  %v715_v7 = vadd.f32 %v2217_v56, %v714_v2  ;;  %v754_v10 = vmul.f32 %v2232_v4, %v2232_v4 }
 0x121   : > { %v2237_v8 = vpop.f32.mrf.mxu0 }
 0x122   : > { %v716_v9 = vadd.f32 %v715_v7, %v2232_v4  ;;  %v784_v11 = vadd.f32 %v783_v6, %v753_v5  ;;  %v757_v21 = vmul.f32 %v2237_v8, %v2237_v8 }
 0x123   : > { %v2242_v12 = vpop.f32.mrf.mxu0 }
 0x124   : > { %v785_v13 = vadd.f32 %v784_v11, %v754_v10  ;;  %v717_v14 = vadd.f32 %v716_v9, %v2242_v12  ;;  %v755_v15 = vmul.f32 %v2242_v12, %v2242_v12 }
 0x125   : > { %v2247_v16 = vpop.f32.mrf.mxu0 }
 0x126   : > { %v718_v18 = vadd.f32 %v2227_v0, %v717_v14  ;;  %v786_v19 = vadd.f32 %v785_v13, %v755_v15  ;;  %v760_v34 = vmul.f32 %v2247_v16, %v2247_v16 }
 0x127   : > { %v2252_v20 = vpop.f32.mrf.mxu0 }
 0x128   : > { %v787_v22 = vadd.f32 %v786_v19, %v756_v17  ;;  %v719_v23 = vadd.f32 %v2237_v8, %v718_v18  ;;  %v758_v27 = vmul.f32 %v2252_v20, %v2252_v20 }
 0x129   : > { %v2257_v25 = vpop.f32.mrf.mxu0 }
 0x12a   : > { %v720_v26 = vadd.f32 %v719_v23, %v2252_v20  ;;  %v788_v28 = vadd.f32 %v787_v22, %v757_v21  ;;  %v761_v38 = vmul.f32 %v2257_v25, %v2257_v25 }
 0x12b   : > { %v2262_v29 = vpop.f32.mrf.mxu0 }
 0x12c   : > { %v789_v30 = vadd.f32 %v788_v28, %v758_v27  ;;  %v721_v31 = vadd.f32 %v720_v26, %v2262_v29  ;;  %v759_v32 = vmul.f32 %v2262_v29, %v2262_v29 }
 0x12d   : > { %v2267_v33 = vpop.f32.mrf.mxu0 }
 0x12e   : > { %v722_v35 = vadd.f32 %v2247_v16, %v721_v31  ;;  %v790_v36 = vadd.f32 %v789_v30, %v759_v32  ;;  %v764_v57 = vmul.f32 %v2267_v33, %v2267_v33 }
 0x12f   : > { %v2272_v37 = vpop.f32.mrf.mxu0 }
 0x130   : > { %v791_v39 = vadd.f32 %v790_v36, %v760_v34  ;;  %v723_v40 = vadd.f32 %v2257_v25, %v722_v35  ;;  %v762_v47 = vmul.f32 %v2272_v37, %v2272_v37 }
 0x131   : > { %v2277_v45 = vpop.f32.mrf.mxu0 }
 0x132   : > { %v724_v46 = vadd.f32 %v723_v40, %v2272_v37  ;;  %v792_v49 = vadd.f32 %v791_v39, %v761_v38  ;;  %v765_v62 = vmul.f32 %v2277_v45, %v2277_v45 }
 0x133   : > { %v2282_v50 = vpop.f32.mrf.mxu0 }
 0x134   : > { %v793_v51 = vadd.f32 %v792_v49, %v762_v47  ;;  %v725_v53 = vadd.f32 %v724_v46, %v2282_v50  ;;  %v763_v54 = vmul.f32 %v2282_v50, %v2282_v50 }
 0x135   : > { %v2287_v55 = vpop.f32.mrf.mxu0 }
 0x136   : > { %v726_v58 = vadd.f32 %v2267_v33, %v725_v53  ;;  %v794_v59 = vadd.f32 %v793_v51, %v763_v54  ;;  %v768_v14 = vmul.f32 %v2287_v55, %v2287_v55 }
 0x137   : > { %v2292_v61 = vpop.f32.mrf.mxu0 }
 0x138   : > { %v795_v63 = vadd.f32 %v794_v59, %v764_v57  ;;  %v727_v1 = vadd.f32 %v2277_v45, %v726_v58  ;;  %v766_v5 = vmul.f32 %v2292_v61, %v2292_v61 }
 0x139   : > { %v2297_v2 = vpop.f32.mrf.mxu0 }
 0x13a   : > { %v728_v3 = vadd.f32 %v727_v1, %v2292_v61  ;;  %v796_v6 = vadd.f32 %v795_v63, %v765_v62  ;;  %v769_v19 = vmul.f32 %v2297_v2, %v2297_v2 }
 0x13b   : > { %v2302_v7 = vpop.f32.mrf.mxu0 }
 0x13c   : > { %v797_v9 = vadd.f32 %v796_v6, %v766_v5  ;;  %v729_v10 = vadd.f32 %v728_v3, %v2302_v7  ;;  %v767_v11 = vmul.f32 %v2302_v7, %v2302_v7 }
 0x13d   : > { %v2307_v13 = vpop.f32.mrf.mxu0 }
 0x13e   : > { %v730_v15 = vadd.f32 %v2287_v55, %v729_v10  ;;  %v798_v17 = vadd.f32 %v797_v9, %v767_v11  ;;  %v772_v36 = vmul.f32 %v2307_v13, %v2307_v13 }
 0x13f   : > { %v2312_v18 = vpop.f32.mrf.mxu0 }
 0x140   : > { %v799_v21 = vadd.f32 %v798_v17, %v768_v14  ;;  %v731_v22 = vadd.f32 %v2297_v2, %v730_v15  ;;  %v770_v27 = vmul.f32 %v2312_v18, %v2312_v18 }
 0x141   : > { %v2317_v23 = vpop.f32.mrf.mxu0 }
 0x142   : > { %v732_v26 = vadd.f32 %v731_v22, %v2312_v18  ;;  %v800_v28 = vadd.f32 %v799_v21, %v769_v19  ;;  %v773_v46 = vmul.f32 %v2317_v23, %v2317_v23 }
 0x143   : > { %v2322_v30 = vpop.f32.mrf.mxu0 }
 0x144   : > { %v801_v31 = vadd.f32 %v800_v28, %v770_v27  ;;  %v733_v32 = vadd.f32 %v732_v26, %v2322_v30  ;;  %v771_v34 = vmul.f32 %v2322_v30, %v2322_v30 }
 0x145   : > { %v2327_v35 = vpop.f32.mrf.mxu0 }
 0x146   : > { %v734_v38 = vadd.f32 %v2307_v13, %v733_v32  ;;  %v802_v39 = vadd.f32 %v801_v31, %v771_v34  ;;  %v776_v1 = vmul.f32 %v2327_v35, %v2327_v35 }
 0x147   : > { %v2332_v40 = vpop.f32.mrf.mxu0 }
 0x148   : > { %v803_v47 = vadd.f32 %v802_v39, %v772_v36  ;;  %v735_v49 = vadd.f32 %v2317_v23, %v734_v38  ;;  %v774_v54 = vmul.f32 %v2332_v40, %v2332_v40  ;;  %v706_v38 = vld [vmem:[%s2572_s5 + $0x38] sm:$0xff]  ;;  %v705_v39 = vld [vmem:[%s2572_s5 + $0x30] sm:$0xff] }
 0x149   : > { %v2337_v51 = vpop.f32.mrf.mxu0 }
 0x14a   : > { %v736_v53 = vadd.f32 %v735_v49, %v2332_v40  ;;  %v804_v57 = vadd.f32 %v803_v47, %v773_v46  ;;  %v777_v6 = vmul.f32 %v2337_v51, %v2337_v51  ;;  %v704_v46 = vld [vmem:[%s2572_s5 + $0x28] sm:$0xff]  ;;  %v703_v47 = vld [vmem:[%s2572_s5 + $0x20] sm:$0xff]  ;;  %v702_v49 = vld [vmem:[%s2572_s5 + $0x18] sm:$0xff] }
 0x14b   : > { %v2342_v58 = vpop.f32.mrf.mxu0 }
 0x14c   : > { %v805_v59 = vadd.f32 %v804_v57, %v774_v54  ;;  %v737_v62 = vadd.f32 %v736_v53, %v2342_v58  ;;  %v775_v63 = vmul.f32 %v2342_v58, %v2342_v58  ;;  %v701_v53 = vld [vmem:[%s2572_s5 + $0x10] sm:$0xff]  ;;  %v700_v54 = vld [vmem:[%s2572_s5 + $0x8] sm:$0xff]  ;;  %v699_v57 = vld [vmem:[%s2572_s5] sm:$0xff] }
 0x14e   : > { %v738_v3 = vadd.f32 %v2327_v35, %v737_v62  ;;  %v806_v5 = vadd.f32 %v805_v59, %v775_v63 }
 0x150   : > { %v739_v9 = vadd.f32 %v2337_v51, %v738_v3  ;;  %v807_v10 = vadd.f32 %v806_v5, %v776_v1 }
 0x152   : > { %v740_v11 = vrot.slane %v739_v9, 4  ;;  %v808_v14 = vadd.f32 %v807_v10, %v777_v6 }
 0x154   : > { %v741_v15 = vadd.f32 %v740_v11, %v739_v9  ;;  %v809_v17 = vrot.slane %v808_v14, 4 }
 0x156   : > { %v742_v19 = vrot.slane %v741_v15, 2  ;;  %v810_v21 = vadd.f32 %v809_v17, %v808_v14 }
 0x158   : > { %v743_v22 = vadd.f32 %v742_v19, %v741_v15  ;;  %v811_v26 = vrot.slane %v810_v21, 2  ;;  %v1424_v15 = vld [vmem:[%s2569_s2] ss:$0 sm:$0xff] }
 0x15a   : > { %v744_v27 = vrot.slane %v743_v22, 1  ;;  %v812_v28 = vadd.f32 %v811_v26, %v810_v21 }
 0x15c   : > { %v813_v31 = vrot.slane %v812_v28, 1  ;;  %v745_v32 = vadd.f32 %v744_v27, %v743_v22 }
 0x15e   : > { %v814_v34 = vadd.f32 %v813_v31, %v812_v28  ;;  %v708_v28 = vld [vmem:[%s2570_s3] sm:$0x1] }
 0x160   : > { %v816_v36 = vsel %vm815_vm1, %v745_v32, %v814_v34 }
 0x161   : > { %1722 = vmatmul.mubr.f32.vlgmr.msra.gmra.mxu1 %v816_v36 }
 0x162   : > { %1740 = vmatprep.mubr.msk.f32.mxu1 %vm1951_vm0, %v1950_v24  ;;  %1725 = vmatpush3.msra.mxu1 %v706_v38 }
 0x163   : > { %1726 = vmatprep.subr.mxu1 %v1950_v24 }
 0x164   : > { %1727 = vmatpush3.msra.mxu1 %v705_v39 }
 0x165   : > { %1728 = vmatprep.subr.mxu1 %v1950_v24 }
 0x166   : > { %1729 = vmatpush3.msra.mxu1 %v704_v46 }
 0x167   : > { %1730 = vmatprep.subr.mxu1 %v1950_v24 }
 0x168   : > { %1731 = vmatpush3.msra.mxu1 %v703_v47 }
 0x169   : > { %1732 = vmatprep.subr.mxu1 %v1950_v24 }
 0x16a   : > { %1733 = vmatpush3.msra.mxu1 %v702_v49 }
 0x16b   : > { %1734 = vmatprep.subr.mxu1 %v1950_v24 }
 0x16c   : > { %1735 = vmatpush3.msra.mxu1 %v701_v53 }
 0x16d   : > { %1736 = vmatprep.subr.mxu1 %v1950_v24 }
 0x16e   : > { %1737 = vmatpush3.msra.mxu1 %v700_v54 }
 0x16f   : > { %1738 = vmatprep.subr.mxu1 %v1950_v24  ;;  %v983_v24 = vlaneseq }
 0x170   : > { %1739 = vmatpush3.msra.mxu1 %v699_v57 }
 0x171   : > { %v984_v14 = vshrl.u32 %v983_v24, 7 }
 0x173   : > { %v985_v17 = vsub.s32 1, %v984_v14  ;;  %v1022_v31 = vsub.s32 0, %v984_v14 }
 0x221   : > { %v883_v59 = vpop.f32.mrf.mxu1 }
 0x222   : > { %v887_v62 = vmul.f32 0.001953125, %v883_v59 }
 0x223   : > { %v1723_v63 = vpop.f32.mrf.mxu1 }
 0x224   : > { %v888_v1 = vmul.f32 %v887_v62, %v887_v62 }
 0x226   : > { %v890_v3 = vrot.slane %v888_v1, 7 }
 0x228   : > { %v892_v5 = vsub.f32 %v887_v62, %v890_v3 }
 0x22a   : > { %v893_v6 = vmax.f32 %v892_v5, 0.0 }
 0x22c   : > { %v894_v9 = vadd.f32 1e-05, %v893_v6 }
 0x22e   : > { %1835 = vrsqrt.f32 %v894_v9 }
 0x23b   : > { %v1836_v10 = vpop.eup %1835 }
 0x23c   : > { %v896_v11 = vsel %vm815_vm1, %v887_v62, %v1836_v10 }
 0x23d   : > { %1741 = vmatmul.mubr.msk.f32.vlgmr.msra.gmra.mxu1 %vm897_vm2, %v896_v11 }
 0x2fd   : > { %v967_v19 = vpop.f32.mrf.mxu1 }
 0x2fe   : > { %v977_v21 = vmul.f32 %v1424_v15, %v967_v19 }
 0x2ff   : > { %v1742_v22 = vpop.f32.mrf.mxu1 }
 0x300   : > { %v979_v26 = vrot.slane %v977_v21, 1  ;;  %v986_v27 = vrot.slane %v977_v21, %v985_v17 }
 0x302   : > { %v981_v32 = vmul.f32 %v979_v26, %v967_v19  ;;  %v987_v34 = vmul.f32 %v986_v27, %v2195_v42  ;;  %v988_v36 = vmul.f32 %v986_v27, %v2199_v44  ;;  %v989_v38 = vmul.f32 %v2193_v41, %v986_v27 }
 0x303   : > { %v990_v39 = vmul.f32 %v2197_v43, %v986_v27  ;;  %v991_v46 = vmul.f32 %v986_v27, %v2212_v52  ;;  %v992_v47 = vmul.f32 %v986_v27, %v2222_v60  ;;  %v993_v49 = vmul.f32 %v2207_v48, %v986_v27 }
 0x304   : > { %v982_v53 = vsub.f32 %v708_v28, %v981_v32  ;;  %v994_v54 = vmul.f32 %v2217_v56, %v986_v27  ;;  %v995_v57 = vmul.f32 %v986_v27, %v2232_v4  ;;  %v996_v59 = vmul.f32 %v986_v27, %v2242_v12 }
 0x305   : > { %v997_v42 = vmul.f32 %v2227_v0, %v986_v27  ;;  %v998_v44 = vmul.f32 %v2237_v8, %v986_v27  ;;  %v999_v41 = vmul.f32 %v986_v27, %v2252_v20  ;;  %v1000_v43 = vmul.f32 %v986_v27, %v2262_v29 }
 0x306   : > { %v1023_v52 = vrot.slane %v982_v53, %v1022_v31  ;;  %v1001_v60 = vmul.f32 %v2247_v16, %v986_v27  ;;  %v1002_v48 = vmul.f32 %v2257_v25, %v986_v27  ;;  %v1003_v62 = vmul.f32 %v986_v27, %v2272_v37 }
 0x307   : > { %v1004_v56 = vmul.f32 %v986_v27, %v2282_v50  ;;  %v1005_v4 = vmul.f32 %v2267_v33, %v986_v27  ;;  %v1006_v12 = vmul.f32 %v2277_v45, %v986_v27  ;;  %v1007_v0 = vmul.f32 %v986_v27, %v2292_v61 }
 0x308   : > { %v1008_v8 = vmul.f32 %v986_v27, %v2302_v7  ;;  %v1009_v20 = vmul.f32 %v2287_v55, %v986_v27  ;;  %v1010_v29 = vmul.f32 %v2297_v2, %v986_v27  ;;  %v1011_v16 = vmul.f32 %v986_v27, %v2312_v18 }
 0x309   : > { %v1012_v25 = vmul.f32 %v986_v27, %v2322_v30  ;;  %v1013_v37 = vmul.f32 %v2307_v13, %v986_v27  ;;  %v1014_v50 = vmul.f32 %v2317_v23, %v986_v27  ;;  %v1015_v33 = vmul.f32 %v986_v27, %v2332_v40 }
 0x30a   : > { %v1016_v45 = vmul.f32 %v986_v27, %v2342_v58  ;;  %v1017_v61 = vmul.f32 %v2327_v35, %v986_v27  ;;  %v1018_v7 = vmul.f32 %v2337_v51, %v986_v27  ;;  %v2426_v63 = vadd.f32 %v1023_v52, %v987_v34 }
 0x30b   : > { %v2428_v55 = vadd.f32 %v1023_v52, %v988_v36  ;;  %v2430_v2 = vadd.f32 %v1023_v52, %v989_v38  ;;  %v2432_v18 = vadd.f32 %v1023_v52, %v990_v39  ;;  %v2434_v30 = vadd.f32 %v1023_v52, %v991_v46 }
 0x30c   : > { %v2436_v13 = vadd.f32 %v1023_v52, %v992_v47  ;;  %v2438_v23 = vadd.f32 %v1023_v52, %v993_v49  ;;  %v2440_v40 = vadd.f32 %v1023_v52, %v994_v54  ;;  %v2442_v58 = vadd.f32 %v1023_v52, %v995_v57 }
 0x30d   : > { %v2444_v35 = vadd.f32 %v1023_v52, %v996_v59  ;;  %v2446_v51 = vadd.f32 %v1023_v52, %v997_v42  ;;  %v2448_v1 = vadd.f32 %v1023_v52, %v998_v44  ;;  %v2450_v3 = vadd.f32 %v1023_v52, %v999_v41 }
 0x30e   : > { %v1038_v5 = vadd.f32 %v1023_v52, %v1000_v43  ;;  %v1039_v6 = vadd.f32 %v1023_v52, %v1001_v60  ;;  %v1040_v9 = vadd.f32 %v1023_v52, %v1002_v48  ;;  %v1041_v10 = vadd.f32 %v1023_v52, %v1003_v62 }
 0x30f   : > { %v1042_v11 = vadd.f32 %v1023_v52, %v1004_v56  ;;  %v2452_v24 = vadd.f32 %v1023_v52, %v1005_v4  ;;  %v2454_v14 = vadd.f32 %v1023_v52, %v1006_v12  ;;  %v2456_v15 = vadd.f32 %v1023_v52, %v1007_v0 }
 0x310   : > { %v1046_v17 = vadd.f32 %v1023_v52, %v1008_v8  ;;  %v1047_v19 = vadd.f32 %v1023_v52, %v1009_v20  ;;  %v1048_v21 = vadd.f32 %v1023_v52, %v1010_v29  ;;  %v1049_v22 = vadd.f32 %v1023_v52, %v1011_v16 }
 0x311   : > { %v1050_v26 = vadd.f32 %v1023_v52, %v1012_v25  ;;  %v2458_v27 = vadd.f32 %v1023_v52, %v1013_v37  ;;  %v2460_v28 = vadd.f32 %v1023_v52, %v1014_v50  ;;  %v2462_v31 = vadd.f32 %v1023_v52, %v1015_v33 }
 0x312   : > { %v2464_v32 = vadd.f32 %v1023_v52, %v1016_v45  ;;  %v2466_v34 = vadd.f32 %v1023_v52, %v1017_v61  ;;  %v2468_v36 = vadd.f32 %v1023_v52, %v1018_v7  ;;  %v1057_v38 = vmax.f32 %v2426_v63, 0.0 }
 0x313   : > { %v1058_v39 = vmax.f32 %v2428_v55, 0.0  ;;  %v1059_v46 = vmax.f32 %v2430_v2, 0.0  ;;  %v1060_v47 = vmax.f32 %v2432_v18, 0.0  ;;  %v1061_v49 = vmax.f32 %v2434_v30, 0.0 }
 0x314   : > { %v1062_v53 = vmax.f32 %v2436_v13, 0.0  ;;  %v1063_v54 = vmax.f32 %v2438_v23, 0.0  ;;  %v1064_v57 = vmax.f32 %v2440_v40, 0.0  ;;  %v1065_v59 = vmax.f32 %v2442_v58, 0.0 }
 0x315   : > { %v1066_v42 = vmax.f32 %v2444_v35, 0.0  ;;  %v1067_v44 = vmax.f32 %v2446_v51, 0.0  ;;  %v1068_v41 = vmax.f32 %v2448_v1, 0.0  ;;  %v1069_v43 = vmax.f32 %v2450_v3, 0.0 }
 0x316   : > { %v1070_v52 = vmax.f32 %v1038_v5, 0.0  ;;  %v1071_v60 = vmax.f32 %v1039_v6, 0.0  ;;  %v1072_v48 = vmax.f32 %v1040_v9, 0.0  ;;  %v1073_v62 = vmax.f32 %v1041_v10, 0.0 }
 0x317   : > { %v1074_v56 = vmax.f32 %v1042_v11, 0.0  ;;  %v1075_v4 = vmax.f32 %v2452_v24, 0.0  ;;  %v1076_v12 = vmax.f32 %v2454_v14, 0.0  ;;  %v1077_v0 = vmax.f32 %v2456_v15, 0.0 }
 0x318   : > { %v1078_v8 = vmax.f32 %v1046_v17, 0.0  ;;  %v1079_v20 = vmax.f32 %v1047_v19, 0.0  ;;  %v1080_v29 = vmax.f32 %v1048_v21, 0.0  ;;  %v1081_v16 = vmax.f32 %v1049_v22, 0.0 }
 0x319   : > { %v1082_v25 = vmax.f32 %v1050_v26, 0.0  ;;  %v1083_v37 = vmax.f32 %v2458_v27, 0.0  ;;  %v1084_v50 = vmax.f32 %v2460_v28, 0.0  ;;  %v1085_v33 = vmax.f32 %v2462_v31, 0.0 }
 0x31a   : > { %v1086_v45 = vmax.f32 %v2464_v32, 0.0  ;;  %v1087_v61 = vmax.f32 %v2466_v34, 0.0  ;;  %v1088_v7 = vmax.f32 %v2468_v36, 0.0  ;;  %v1499_v63 = vpack.c.bf16 %v1058_v39, %v1057_v38 }
 0x31b   : > { %v1504_v55 = vpack.c.bf16 %v1060_v47, %v1059_v46  ;;  %v1509_v2 = vpack.c.bf16 %v1062_v53, %v1061_v49  ;;  %v1514_v18 = vpack.c.bf16 %v1064_v57, %v1063_v54  ;;  %v1519_v30 = vpack.c.bf16 %v1066_v42, %v1065_v59 }
 0x31c   : > { %1500 = vst [vmem:[%s2495_s30] sm:$0xff] %v1499_v63   ;;  %v1524_v13 = vpack.c.bf16 %v1068_v41, %v1067_v44  ;;  %v1529_v23 = vpack.c.bf16 %v1070_v52, %v1069_v43  ;;  %v1534_v40 = vpack.c.bf16 %v1072_v48, %v1071_v60  ;;  %v1539_v58 = vpack.c.bf16 %v1074_v56, %v1073_v62 }
 0x31d   : > { %1576 = vst [vmem:[%s2495_s30 + $0x8] sm:$0xff] %v1504_v55   ;;  %1577 = vst [vmem:[%s2495_s30 + $0x10] sm:$0xff] %v1509_v2   ;;  %v1544_v35 = vpack.c.bf16 %v1076_v12, %v1075_v4  ;;  %v1549_v51 = vpack.c.bf16 %v1078_v8, %v1077_v0  ;;  %v1554_v1 = vpack.c.bf16 %v1080_v29, %v1079_v20 }
 0x31e   : > { %1578 = vst [vmem:[%s2495_s30 + $0x18] sm:$0xff] %v1514_v18   ;;  %1579 = vst [vmem:[%s2495_s30 + $0x20] sm:$0xff] %v1519_v30   ;;  %v1559_v3 = vpack.c.bf16 %v1082_v25, %v1081_v16  ;;  %v1564_v5 = vpack.c.bf16 %v1084_v50, %v1083_v37  ;;  %v1569_v6 = vpack.c.bf16 %v1086_v45, %v1085_v33 }
 0x31f   : > { %1580 = vst [vmem:[%s2495_s30 + $0x28] sm:$0xff] %v1524_v13   ;;  %1581 = vst [vmem:[%s2495_s30 + $0x30] sm:$0xff] %v1529_v23   ;;  %v1574_v9 = vpack.c.bf16 %v1088_v7, %v1087_v61 }
 0x320   : > { %1582 = vst [vmem:[%s2495_s30 + $0x38] sm:$0xff] %v1534_v40   ;;  %1583 = vst [vmem:[%s2495_s30 + $0x40] sm:$0xff] %v1539_v58  }
 0x321   : > { %1584 = vst [vmem:[%s2495_s30 + $0x48] sm:$0xff] %v1544_v35   ;;  %1585 = vst [vmem:[%s2495_s30 + $0x50] sm:$0xff] %v1549_v51  }
 0x322   : > { %1586 = vst [vmem:[%s2495_s30 + $0x58] sm:$0xff] %v1554_v1   ;;  %1587 = vst [vmem:[%s2495_s30 + $0x60] sm:$0xff] %v1559_v3  }
 0x323   : > { %1588 = vst [vmem:[%s2495_s30 + $0x68] sm:$0xff] %v1564_v5   ;;  %1589 = vst [vmem:[%s2495_s30 + $0x70] sm:$0xff] %v1569_v6  }
 0x324   : > { %1590 = vst [vmem:[%s2495_s30 + $0x78] sm:$0xff] %v1574_v9  }
 0x325   : > { %1878 = shalt.err (!%p1875_p6)
}
 0x326   : > { %s1879_s14 = scalar_lea.hbm %s2506_s18, 2048  ;;  %s1883_s13 = scalar_lea.hbm %s2573_s6, 4096 }
 0x327   : > { %p1880_p7 = scmp.ne.s32.totalorder %s2506_s18, %s1879_s14  ;;  %p1884_p13 = scmp.lt.s32.totalorder %s2506_s18, %s2573_s6 }
 0x328   : > { %p1885_p2 = scmp.lt.s32.totalorder %s1883_s13, %s1879_s14 }
 0x329   : > { %p1881_p10 = pnand %p1880_p7, %p2041_p9 }
 0x32a   : > { %p1886_p8 = por %p1885_p2, %p1884_p13 }
 0x32b   : > { %p1882_p4 = pneg %p1881_p10 }
 0x32d   : > { %p1887_p12 = pnand %p1886_p8, %p1882_p4 }
 0x32f   : > { %1890 = shalt.err (!%p1887_p12)
}
 0x330   : > { %s1953_s17 = smov 64   ;;  %s1954_s27 = smov 4  }
 0x331   : > { %1745 = dma.vmem_to_hbm [thread:$0]  (%p2041_p9), %s2508_s19, 2048, %s2506_s18, %s1250_s20, %s1953_s17, %s1953_s17, %s1954_s27  }
 0x332 PF: > { %s1279_s28 = sand.u32 1, %s1925_s21   ;;  %p2579_p0 = scmp.ge.s32.totalorder %s1945_s26, 2 }
 0x333   : > { %s1280_s8 = scalar_lea.sflag [#allocation4], %s1279_s28 }
 0x334   : > { %p1752_p1 = pnand %p2579_p0, %p2048_p11 }
 0x336   : > { %p1753_p3 = pneg %p1752_p1 }
 0x338   : > { %1920 = dma.done.wait (%p1753_p3), %s1280_s8, 2048  }
 0x339   : > { %1922 = vsyncadd (%p1753_p3), %s1280_s8, 4294965248  ;;  %s22_s26 = sadd.s32 1, %s1945_s26   ;;  %s2580_s21 = smov %s1929_s22 }
 0x33a   : > { %p19_p5 = scmp.ge.s32.totalorder %s22_s26, 4   ;;  %s2581_s22 = smov %s1933_s23 }
 0x33b   : > { %s2582_s23 = smov %s2046_s11  ;;  %s2583_s24 = smov %s1941_s25 }
 0x33c   : > { %s2584_s25 = smov %s2586_s29  ;;  %21 = sbr.rel (!%p19_p5) target bundleno = 6 (0x6), region = 98 }
 0x341   :  { %1285 = vsyncpa [#allocation3], 1 }
 0x342   :  { %1287 = vsyncpa [#allocation3 + $0x1], 1 }
 0x343   :  { %1288 = vsyncpa [#allocation4], 1 }
 0x344   :  { %1290 = vsyncpa [#allocation4 + $0x1], 1 }

</bundles_post_ra>
